<compile_context>
chip_gen: v6e
topology: v6e:2x2x1
jax: 0.10.0
libtpu: 0.0.40
codegen_flags: <defaults>
</compile_context>

<pallas_src>
import jax
import jax.numpy as jnp
from jax.experimental import pallas as pl
from jax.experimental.pallas import tpu as pltpu


def _attention_kernel(h_ref, e_ref, o_ref):
    # h_ref: (tB, H)   e_ref: (S, tB, H)   o_ref: (tB, S)
    h = h_ref[...]                                   # native dtype
    e = e_ref[...]                                   # native dtype

    # Dot score: multiply in native dtype, accumulate over H (lane axis) in f32.
    # (Batched mat-vec: every batch row has its own H-vector, so there is no
    #  shared-matrix MXU mapping; the kernel is HBM-bound and the VPU/XLU reduce
    #  already sits on the roofline.)
    scores_sb = jnp.sum(e * h[None, :, :], axis=2, dtype=jnp.float32)   # (S, tB)
    scores = scores_sb.T                                                # (tB, S)

    # Numerically stable softmax over the sequence axis (lanes).
    m = jnp.max(scores, axis=1, keepdims=True)        # (tB, 1)
    p = jnp.exp(scores - m)                           # (tB, S)
    denom = jnp.sum(p, axis=1, keepdims=True)         # (tB, 1)
    attn = p / denom                                  # exact divide: rows sum to 1

    o_ref[...] = attn.astype(o_ref.dtype)             # lane-dense 2-D store


def _round_up(x, m):
    return -(-x // m) * m


def _vmem_budgets():
    """(per-block budget, scoped-VMEM limit) tuned per TPU generation.
    v5e/v6e: 128 MiB VMEM per TensorCore -> big blocks amortize per-step overhead.
    v7x (or unknown backend): 64 MiB VMEM -> stay conservative."""
    try:
        cap = getattr(pltpu.get_tpu_info(), "vmem_capacity_bytes", None)
    except Exception:
        cap = None
    if cap is not None and cap >= 128 * 1024 * 1024:          # v5e / v6e
        return 20 * 1024 * 1024, 96 * 1024 * 1024
    return 8 * 1024 * 1024, 32 * 1024 * 1024                  # v7x / unknown


def _pick_batch_tile(S, B, H, in_itemsize, out_itemsize, block_budget_bytes):
    """Largest sublane-aligned batch tile whose *padded* VMEM footprint
    (double-buffered encoder/hidden/output blocks + un-fused f32 temporaries)
    fits the per-block budget, capped so the batch grid has >=2 steps whenever
    possible (lets both v7x TensorCores pull on the shared HBM)."""
    sub = max(8, 32 // in_itemsize)          # sublane multiple: f32->8, bf16->16, int8->32
    if B <= sub:
        return B                             # block == full array dims (always layout-legal)

    H_pad = _round_up(H, 128)                # lane padding of the hidden axis
    S_pad = _round_up(S, 128)                # lane padding of the output seq axis
    per_row = (
        2 * S * H_pad * in_itemsize          # encoder block, double-buffered
        + 2 * H_pad * in_itemsize            # hidden block, double-buffered
        + 2 * S_pad * out_itemsize           # output block, double-buffered
        + S * H_pad * 4                      # possible un-fused f32 product temporary
        + 2 * S_pad * 4                      # f32 scores in both layouts
    )
    tB = max(block_budget_bytes // per_row, sub) // sub * sub
    # TODO(synk): if even `sub` rows exceed the budget (very large S*H) this needs an
    # S-tiled online-softmax variant; as written it fails loudly at compile time
    # (VMEM limit) instead of silently computing wrong numbers.
    tB = min(tB, _round_up(pl.cdiv(B, 2), sub))   # >=2 grid steps (v7x megacore)
    return max(tB, sub)


def attention_forward(hidden, encoder_outputs):
    """hidden: (1, B, H) (or already-squeezed (B, H)); encoder_outputs: (S, B, H).
    Returns (B, 1, S), matching the PyTorch module."""
    S, B, H = encoder_outputs.shape
    if hidden.ndim == 3:
        if hidden.shape != (1, B, H):
            raise ValueError(f"hidden must be (1, {B}, {H}); got {hidden.shape}")
        h2d = hidden[0]                               # (B, H) — cheap squeeze, no HBM pass
    else:
        h2d = hidden                                  # (B, H)

    out_dtype = jnp.promote_types(hidden.dtype, encoder_outputs.dtype)
    block_budget, vmem_limit = _vmem_budgets()
    tB = _pick_batch_tile(
        S, B, H,
        jnp.dtype(encoder_outputs.dtype).itemsize,
        jnp.dtype(out_dtype).itemsize,
        block_budget,
    )

    out2d = pl.pallas_call(
        _attention_kernel,
        out_shape=jax.ShapeDtypeStruct((B, S), out_dtype),
        grid=(pl.cdiv(B, tB),),
        in_specs=[
            pl.BlockSpec((tB, H), lambda i: (i, 0)),         # hidden (B, H)
            pl.BlockSpec((S, tB, H), lambda i: (0, i, 0)),   # encoder, native (S, B, H)
        ],
        out_specs=pl.BlockSpec((tB, S), lambda i: (i, 0)),   # lane-dense 2-D output
        compiler_params=pltpu.CompilerParams(
            dimension_semantics=("parallel",),               # shard batch blocks across TCs
            vmem_limit_bytes=vmem_limit,
        ),
    )(h2d, encoder_outputs)

    return out2d[:, None, :]                                 # (B, 1, S)


if __name__ == "__main__":
    key = jax.random.PRNGKey(0)
    k1, k2 = jax.random.split(key)

    S, B, H = 8, 2, 32   # seq=8, batch=2, hidden_size=32
    hidden = jax.random.normal(k1, (1, B, H), dtype=jnp.float32)
    encoder_outputs = jax.random.normal(k2, (S, B, H), dtype=jnp.float32)

    out = jax.block_until_ready(attention_forward(hidden, encoder_outputs))

    # Reference check in plain JAX (same math as the PyTorch forward).
    scores_ref = jnp.sum(hidden * encoder_outputs, axis=2)       # (S, B)
    ref = jax.nn.softmax(scores_ref.T, axis=1)[:, None, :]       # (B, 1, S)

    assert out.shape == (B, 1, S)
    assert jnp.allclose(out, ref, rtol=1e-4, atol=1e-6), float(jnp.max(jnp.abs(out - ref)))

    print("KERNEL_OK")
</pallas_src>

<mosaic_0001>
module attributes {stable_mosaic.version = 11 : i64} {
  func.func @_attention_kernel(%arg0: i32, %arg1: memref<2x32xf32, #tpu.memory_space<vmem>>, %arg2: memref<8x2x32xf32, #tpu.memory_space<vmem>>, %arg3: memref<2x8xf32, #tpu.memory_space<vmem>>) attributes {dimension_semantics = [#tpu.dimension_semantics<parallel>], iteration_bounds = array<i64: 1>, scalar_prefetch = 0 : i64, scratch_operands = 0 : i64, tpu.core_type = #tpu.core_type<tc>, window_params = [{transform_indices = @transform_0, window_bounds = array<i64: 2, 32>}, {transform_indices = @transform_1, window_bounds = array<i64: 8, 2, 32>}, {transform_indices = @transform_2, window_bounds = array<i64: 2, 8>}]} {
    %c0 = arith.constant 0 : index
    %c0_0 = arith.constant 0 : index
    %0 = vector.load %arg1[%c0, %c0_0] : memref<2x32xf32, #tpu.memory_space<vmem>>, vector<2x32xf32>
    %c0_1 = arith.constant 0 : index
    %c0_2 = arith.constant 0 : index
    %c0_3 = arith.constant 0 : index
    %1 = vector.load %arg2[%c0_1, %c0_2, %c0_3] : memref<8x2x32xf32, #tpu.memory_space<vmem>>, vector<8x2x32xf32>
    %2 = vector.shape_cast %0 : vector<2x32xf32> to vector<1x2x32xf32>
    %3 = vector.broadcast %2 : vector<1x2x32xf32> to vector<8x2x32xf32>
    %4 = arith.mulf %1, %3 : vector<8x2x32xf32>
    %cst = arith.constant dense<0.000000e+00> : vector<8x2xf32>
    %5 = vector.multi_reduction <add>, %4, %cst [2] : vector<8x2x32xf32> to vector<8x2xf32>
    %6 = tpu.transpose %5, [1, 0] : vector<8x2xf32> -> vector<2x8xf32>
    %cst_4 = arith.constant dense<0xFF800000> : vector<2xf32>
    %7 = vector.multi_reduction <maximumf>, %6, %cst_4 [1] : vector<2x8xf32> to vector<2xf32>
    %8 = vector.shape_cast %7 : vector<2xf32> to vector<2x1xf32>
    %9 = vector.broadcast %8 : vector<2x1xf32> to vector<2x8xf32>
    %10 = arith.subf %6, %9 : vector<2x8xf32>
    %11 = math.exp %10 : vector<2x8xf32>
    %cst_5 = arith.constant dense<0.000000e+00> : vector<2xf32>
    %12 = vector.multi_reduction <add>, %11, %cst_5 [1] : vector<2x8xf32> to vector<2xf32>
    %13 = vector.shape_cast %12 : vector<2xf32> to vector<2x1xf32>
    %14 = vector.broadcast %13 : vector<2x1xf32> to vector<2x8xf32>
    %15 = arith.divf %11, %14 : vector<2x8xf32>
    %c0_6 = arith.constant 0 : index
    %c0_7 = arith.constant 0 : index
    %16 = vector.load %arg3[%c0_6, %c0_7] : memref<2x8xf32, #tpu.memory_space<vmem>>, vector<2x8xf32>
    tpu.vector_store %arg3[%c0_6, %c0_7], %15 {strides = array<i32>} : memref<2x8xf32, #tpu.memory_space<vmem>>, vector<2x8xf32>,
    return
  }
  func.func @transform_0(%arg0: i32) -> (i32, i32) {
    %c0_i32 = arith.constant 0 : i32
    %c0_i32_0 = arith.constant 0 : i32
    return %arg0, %c0_i32 : i32, i32
  }
  func.func @transform_1(%arg0: i32) -> (i32, i32, i32) {
    %c0_i32 = arith.constant 0 : i32
    %c0_i32_0 = arith.constant 0 : i32
    %c0_i32_1 = arith.constant 0 : i32
    return %c0_i32, %arg0, %c0_i32_0 : i32, i32, i32
  }
  func.func @transform_2(%arg0: i32) -> (i32, i32) {
    %c0_i32 = arith.constant 0 : i32
    %c0_i32_0 = arith.constant 0 : i32
    return %arg0, %c0_i32 : i32, i32
  }
}

</mosaic_0001>

<bundles_post_ra>
// kernel: tpu_custom_call.1
= control target key start
LH: loop header
LB: loop body
LE: loop exit
PB: predicated region body
PF: predicated region fallthrough
CT: control target
= control target key end

     0   :  { %7 = vsyncpa [#allocation3], 0  ;;  %s314_s0 = inlined_call_operand.hbm [shape: f32[2,32], index: 0, kind: input, shape index: {}]   ;;  %s315_s1 = inlined_call_operand.hbm [shape: f32[8,2,32], index: 1, kind: input, shape index: {}]   ;;  %s316_s2 = inlined_call_operand.hbm [shape: f32[2,8], index: 2, kind: output, shape index: {}]  }
   0x1   :  { %8 = vsyncpa [#allocation6], 0 }
   0x2   :  { %9 = vsyncpa [#allocation4], 0  ;;  %s274_s9 = smov [#allocation2]   ;;  %s275_s11 = smov [#allocation5]  }
   0x3   :  { %s16_s10 = sshll.u32 %s274_s9, 4  ;;  %s25_s12 = sshll.u32 %s275_s11, 4  ;;  %s17_s10 = int_to_ptr.vmem [resolvable:$true] %s16_s10  ;;  %s26_s12 = int_to_ptr.vmem [resolvable:$true] %s25_s12 }
   0x4   :  { %s216_s13 = scalar_lea.vmem %s17_s10, 32  ;;  %p221_p1 = scmp.lt.s32.totalorder %s17_s10, %s17_s10 }
   0x5   :  { %p217_p0 = scmp.ne.s32.totalorder %s17_s10, %s216_s13  ;;  %p222_p2 = scmp.lt.s32.totalorder %s216_s13, %s216_s13 }
   0x7   :  { %p223_p3 = por %p222_p2, %p221_p1 }
   0x9   :  { %p224_p4 = pnand %p223_p3, %p217_p0 }
   0xb   :  { %227 = shalt.err (!%p224_p4)
}
   0xc   :  { %19 = dma.hbm_to_vmem [thread:$0]  %s314_s0, 32, %s17_s10, [#allocation3]  }
   0xd   :  { %s236_s16 = scalar_lea.vmem %s26_s12, 256  ;;  %p241_p6 = scmp.lt.s32.totalorder %s26_s12, %s26_s12 }
   0xe   :  { %p237_p5 = scmp.ne.s32.totalorder %s26_s12, %s236_s16  ;;  %p242_p7 = scmp.lt.s32.totalorder %s236_s16, %s236_s16 }
  0x10   :  { %p243_p8 = por %p242_p7, %p241_p6 }
  0x12   :  { %p244_p9 = pnand %p243_p8, %p237_p5 }
  0x14   :  { %247 = shalt.err (!%p244_p9)
}
  0x15   :  { %s276_s17 = smov 32   ;;  %s277_s18 = smov 2  }
  0x16   :  { %31 = dma.hbm_to_vmem [thread:$0]  %s315_s1, 256, %s26_s12, [#allocation6], %s276_s17, %s276_s17, %s277_s18  }
  0x17   :  { %268 = dma.done.wait [#allocation3], 32  }
  0x18   :  { %269 = vsyncadd [#allocation3], 4294967264 }
  0x19   :  { %270 = dma.done.wait [#allocation6], 256  }
  0x1a   :  { %271 = vsyncadd [#allocation6], 4294967040  ;;  %vm55_vm0 = vcmask 254976   ;;  %v38_v0 = vld [vmem:[#allocation2] sm:$0x3]  ;;  %v88_v25 = vlaneseq  ;;  %vm122_vm1 = vcmask 1041409  }
  0x1b   :  { %v39_v1 = vld [vmem:[#allocation5] sm:$0x3]  ;;  %v41_v2 = vld [vmem:[#allocation5 + $0x4] sm:$0x3]  ;;  %v40_v5 = vld [vmem:[#allocation5 + $0x2] sm:$0x3] }
  0x1c   :  { %v47_v3 = vmul.f32 %v39_v1, %v38_v0  ;;  %v49_v4 = vmul.f32 %v41_v2, %v38_v0  ;;  %v42_v6 = vld [vmem:[#allocation5 + $0x6] sm:$0x3]  ;;  %v48_v7 = vmul.f32 %v40_v5, %v38_v0  ;;  %v43_v9 = vld [vmem:[#allocation5 + $0x8] sm:$0x3]  ;;  %v44_v10 = vld [vmem:[#allocation5 + $0xa] sm:$0x3] }
  0x1d   :  { %v50_v8 = vmul.f32 %v42_v6, %v38_v0  ;;  %v51_v15 = vmul.f32 %v43_v9, %v38_v0  ;;  %v52_v16 = vmul.f32 %v44_v10, %v38_v0  ;;  %v45_v17 = vld [vmem:[#allocation5 + $0xc] sm:$0x3]  ;;  %v46_v18 = vld [vmem:[#allocation5 + $0xe] sm:$0x3]  ;;  %v89_v26 = vand.u32 127, %v88_v25  ;;  %s278_s0 = smov [#allocation7]  }
  0x1e   :  { %v56_v11 = vsel %vm55_vm0, %v47_v3, 0.0  ;;  %v62_v12 = vsel %vm55_vm0, %v49_v4, 0.0  ;;  %v59_v13 = vsel %vm55_vm0, %v48_v7, 0.0  ;;  %v53_v21 = vmul.f32 %v45_v17, %v38_v0  ;;  %s188_s1 = sshll.u32 %s278_s0, 4  ;;  %s189_s1 = int_to_ptr.vmem [resolvable:$true] %s188_s1 }
  0x1f   :  { %57 = vadd.xlane.f32.xlu0 %v56_v11  ;;  %63 = vadd.xlane.f32.xlu1 %v62_v12  ;;  %v65_v14 = vsel %vm55_vm0, %v50_v8, 0.0  ;;  %v68_v19 = vsel %vm55_vm0, %v51_v15, 0.0  ;;  %v71_v20 = vsel %vm55_vm0, %v52_v16, 0.0  ;;  %v54_v22 = vmul.f32 %v46_v18, %v38_v0  ;;  %s248_s21 = scalar_lea.vmem %s189_s1, 32  ;;  %p253_p11 = scmp.lt.s32.totalorder %s189_s1, %s189_s1 }
  0x20   :  { %v74_v23 = vsel %vm55_vm0, %v53_v21, 0.0  ;;  %v91_v27 = vshrl.u32 %v88_v25, 7  ;;  %vm124_vm2 = vcmask 1042434   ;;  %vm126_vm3 = vcmask 1043459   ;;  %p249_p10 = scmp.ne.s32.totalorder %s189_s1, %s248_s21  ;;  %p254_p12 = scmp.lt.s32.totalorder %s248_s21, %s248_s21 }
  0x21   :  { %v77_v24 = vsel %vm55_vm0, %v54_v22, 0.0  ;;  %vm128_vm4 = vcmask 1044484   ;;  %vm130_vm5 = vcmask 1045509   ;;  %vm132_vm6 = vcmask 1046534  }
  0x22   :  { %v92_v30 = vsub.s32 %v89_v26, %v91_v27  ;;  %vm134_vm7 = vcmask 1047559   ;;  %vm169_vm8 = vcmask 58368   ;;  %p255_p13 = por %p254_p12, %p253_p11 }
  0x23   :  { %60 = vadd.xlane.f32.xlu0 %v59_v13  ;;  %66 = vadd.xlane.f32.xlu1 %v65_v14 }
  0x24   :  { %p256_p0 = pnand %p255_p13, %p249_p10 }
  0x27   :  { %69 = vadd.xlane.f32.xlu0 %v68_v19  ;;  %72 = vadd.xlane.f32.xlu1 %v71_v20 }
  0x2b   :  { %75 = vadd.xlane.f32.xlu0 %v74_v23  ;;  %78 = vadd.xlane.f32.xlu1 %v77_v24 }
  0xa8   :  { %v58_v28 = vpop.xlane.xlu0 %57  ;;  %v64_v29 = vpop.xlane.xlu1 %63 }
  0xa9   :  { %v93_v33 = vrot.slane %v58_v28, %v92_v30  ;;  %v101_v36 = vrot.slane %v64_v29, %v92_v30 }
  0xac   :  { %v61_v31 = vpop.xlane.xlu0 %60  ;;  %v67_v32 = vpop.xlane.xlu1 %66 }
  0xad   :  { %v97_v34 = vrot.slane %v61_v31, %v92_v30  ;;  %v105_v35 = vrot.slane %v67_v32, %v92_v30 }
  0xaf   :  { %v123_v37 = vsel %vm122_vm1, %v97_v34, %v93_v33 }
  0xb0   :  { %v125_v38 = vsel %vm124_vm2, %v101_v36, %v123_v37  ;;  %v70_v39 = vpop.xlane.xlu0 %69  ;;  %v73_v40 = vpop.xlane.xlu1 %72 }
  0xb1   :  { %v127_v41 = vsel %vm126_vm3, %v105_v35, %v125_v38  ;;  %v109_v42 = vrot.slane %v70_v39, %v92_v30  ;;  %v113_v43 = vrot.slane %v73_v40, %v92_v30 }
  0xb3   :  { %v129_v44 = vsel %vm128_vm4, %v109_v42, %v127_v41 }
  0xb4   :  { %v76_v45 = vpop.xlane.xlu0 %75  ;;  %v79_v46 = vpop.xlane.xlu1 %78  ;;  %v131_v49 = vsel %vm130_vm5, %v113_v43, %v129_v44 }
  0xb5   :  { %v117_v47 = vrot.slane %v76_v45, %v92_v30  ;;  %v121_v48 = vrot.slane %v79_v46, %v92_v30 }
  0xb7   :  { %v133_v50 = vsel %vm132_vm6, %v117_v47, %v131_v49 }
  0xb8   :  { %v135_v51 = vsel %vm134_vm7, %v121_v48, %v133_v50 }
  0xb9   :  { %137 = vxpose.xlu0.b32.start.end [1/1] (short) (narrow) %v135_v51, 8 }
 0x135   :  { %v153_v52 = vpop.trf.xlu0 }
 0x136   :  { %v170_v53 = vsel %vm169_vm8, %v153_v52, -inf }
 0x137   :  { %171 = vmax.xlane.f32.xlu1 %v170_v53 }
 0x1c0   :  { %v172_v54 = vpop.xlane.xlu1 %171 }
 0x1c1   :  { %v173_v55 = vsub.f32 %v153_v52, %v172_v54 }
 0x1c3   :  { %v174_v56 = vmul.f32 1.442695, %v173_v55 }
 0x1c5   :  { %204 = vpow2.f32 %v174_v56 }
 0x1d2   :  { %v205_v57 = vpop.eup %204 }
 0x1d3   :  { %v176_v58 = vsel %vm169_vm8, %v205_v57, 0.0 }
 0x1d4   :  { %177 = vadd.xlane.f32.xlu1 %v176_v58 }
 0x25d   :  { %v178_v59 = vpop.xlane.xlu1 %177 }
 0x25e   :  { %206 = vrcp.f32 %v178_v59 }
 0x26b   :  { %v207_v60 = vpop.eup %206 }
 0x26c   :  { %v180_v61 = vmul.f32 %v207_v60, %v205_v57 }
 0x26e   :  { %181 = vst.msk [vmem:[#allocation7] sm:$0x3] %vm169_vm8, %v180_v61 }
 0x26f   :  { %259 = shalt.err (!%p256_p0)
}
 0x270   :  { %191 = dma.vmem_to_hbm [thread:$0]  %s189_s1, 32, %s316_s2, [#allocation4]  }
 0x271   :  { %272 = dma.done.wait [#allocation4], 32  }
 0x272   :  { %273 = vsyncadd [#allocation4], 4294967264 }
 0x273   :  { %195 = vsyncpa [#allocation3], 1 }
 0x274   :  { %196 = vsyncpa [#allocation6], 1 }
 0x275   :  { %197 = vsyncpa [#allocation4], 1 }

</bundles_post_ra>
